<compile_context>
chip_gen: v6e
topology: v6e:2x2x1
jax: 0.10.0
libtpu: 0.0.40
codegen_flags: <defaults>
</compile_context>

<pallas_src>
import functools

import jax
import jax.numpy as jnp
from jax.experimental import pallas as pl
from jax.experimental.pallas import tpu as pltpu


_TARGET_X_TILE_BYTES = 2 << 20     # ~2 MB x-slab per grid step (measured sweet spot)
_MIN_SPLIT_TILE_BYTES = 512 << 10  # only shrink tiles for step count if they stay >=512 KB
_MIN_GRID_STEPS = 8                # ~4 steps per TensorCore on 2-TC chips (v7x)
_SMALL_N_THRESHOLD = 2048          # below this, XLA's fused matmuls beat kernel launch cost
_BF16_AUTO_THRESHOLD = 4096        # default to bf16 operands for big node counts


def _round_up(a, b):
    return (a + b - 1) // b * b


def _mlp_kernel(x_ref, w1_ref, b1_ref, w2_ref, b2_ref, w3_ref, b3_ref, o_ref):
    """relu(x@W1+b1) -> dropout(eval: identity) -> relu(.@W2+b2) -> .@W3+b3."""
    # Layer 1 (MXU, f32 accumulation).
    h = jnp.dot(x_ref[...], w1_ref[...], preferred_element_type=jnp.float32)
    h = jnp.maximum(h + b1_ref[...], 0.0)
    # Dropout(p=0.3) in eval/inference mode is the identity.
    # TODO(synk): training-mode dropout would need pltpu.prng_seed/prng_random_bits.
    # Layer 2 (cast activations to the weight dtype: bf16 fast path / f32 no-op).
    h = jnp.dot(h.astype(w2_ref.dtype), w2_ref[...],
                preferred_element_type=jnp.float32)
    h = jnp.maximum(h + b2_ref[...], 0.0)
    # Layer 3 (no activation).
    o = jnp.dot(h.astype(w3_ref.dtype), w3_ref[...],
                preferred_element_type=jnp.float32)
    o = (o + b3_ref[...]).astype(o_ref.dtype)
    # Lane-dense store: fold consecutive rows into the 128-lane dim so the store
    # is an unmasked vst instead of a C_out(<128)-lane masked vst.msk.
    # (When fold == 1 this reshape is the identity.)
    o_ref[...] = o.reshape(o_ref.shape)


def _choose_tile(N, C_in, itemsize, fold):
    """Row tile: ~2 MB x-slab, >= _MIN_GRID_STEPS steps once tiles stay big."""
    rows_target = max(8, _TARGET_X_TILE_BYTES // max(1, C_in * itemsize))
    rows_min_steps = pl.cdiv(N, _MIN_GRID_STEPS)
    if rows_min_steps * C_in * itemsize >= _MIN_SPLIT_TILE_BYTES:
        rows_target = min(rows_target, rows_min_steps)

    # Single-block case: cover all rows in one block ("equals full dim" rule
    # keeps the folded output block legal without 8-row alignment).
    single = _round_up(N, max(8, fold))
    # Multi-block case: x rows % 8 == 0 and folded-out rows % 8 == 0.
    multi_align = 8 * fold
    tile_n = _round_up(rows_target, multi_align)
    if tile_n >= single:
        tile_n = single
    return tile_n


def _pallas_mlp(x, w1, b1, w2, b2, w3, b3, *, N, C_in, H, C_out,
                tile_n, fold, out_dtype):
    grid_n = pl.cdiv(N, tile_n)
    out_rows = grid_n * (tile_n // fold)      # fully covered -> no partial out blocks
    out_cols = fold * C_out

    x_itemsize = jnp.dtype(x.dtype).itemsize
    w_itemsize = jnp.dtype(w1.dtype).itemsize
    o_itemsize = jnp.dtype(out_dtype).itemsize
    weight_bytes = (C_in * H + H * H + H * C_out + 2 * H + C_out) * w_itemsize
    # Weights/biases are fetched once; single-buffer them only when they are big
    # enough for the default double buffers to matter (v5e 16 MiB scoped VMEM,
    # v7x 64 MiB physical VMEM).
    single_buffer_weights = weight_bytes > (4 << 20)

    def const_spec(shape):
        if single_buffer_weights:
            return pl.BlockSpec(shape, lambda i: (0, 0),
                                pipeline_mode=pl.Buffered(1))
        return pl.BlockSpec(shape, lambda i: (0, 0))

    in_specs = [
        pl.BlockSpec((tile_n, C_in), lambda i: (i, 0)),   # x: streamed by rows
        const_spec((C_in, H)),                            # w1 (resident)
        const_spec((1, H)),                               # b1
        const_spec((H, H)),                               # w2
        const_spec((1, H)),                               # b2
        const_spec((H, C_out)),                           # w3
        const_spec((1, C_out)),                           # b3
    ]
    out_specs = pl.BlockSpec((tile_n // fold, out_cols), lambda i: (i, 0))

    # Scheduler hint for XLA around the custom call.
    cost = pl.CostEstimate(
        flops=2 * N * (C_in * H + H * H + H * C_out),
        transcendentals=0,
        bytes_accessed=(N * C_in * x_itemsize + weight_bytes
                        + out_rows * out_cols * o_itemsize),
    )

    # VMEM budget: double-buffered x tile + double-buffered out tile + weights.
    vmem_est = (2 * tile_n * C_in * x_itemsize
                + 2 * (tile_n // fold) * out_cols * o_itemsize
                + (1 if single_buffer_weights else 2) * weight_bytes)
    vmem_limit = None
    if vmem_est > (12 << 20):
        # Raise the scoped-VMEM limit (16 MiB default on v5e, 32 MiB on v6e/v7x),
        # capped below v7x's 64 MiB physical VMEM.
        vmem_limit = min(int(vmem_est * 1.25) + (2 << 20), 60 << 20)

    out_folded = pl.pallas_call(
        _mlp_kernel,
        out_shape=jax.ShapeDtypeStruct((out_rows, out_cols), out_dtype),
        grid_spec=pltpu.PrefetchScalarGridSpec(
            num_scalar_prefetch=0,
            grid=(grid_n,),
            in_specs=in_specs,
            out_specs=out_specs,
        ),
        compiler_params=pltpu.CompilerParams(
            dimension_semantics=("parallel",),
            vmem_limit_bytes=vmem_limit,
        ),
        cost_estimate=cost,
    )(x, w1, b1, w2, b2, w3, b3)

    # (out_rows, fold*C_out) row-major is bitwise identical to
    # (out_rows*fold, C_out) row-major -> this reshape is free (no HBM copy).
    return out_folded.reshape(out_rows * fold, C_out)[:N]


def nn_model_forward(x, params, edge_index=None, *, use_bf16=None,
                     small_n_threshold=_SMALL_N_THRESHOLD):
    """Pallas implementation of NNModel.forward (eval mode).

    x: [N, C_in]; params = (w1, b1, w2, b2, w3, b3) with weights [C_in, C_out]
    and biases [1, C_out]. edge_index is accepted for signature parity but is
    unused, exactly like the reference forward.
    """
    del edge_index  # unused by the reference forward
    w1, b1, w2, b2, w3, b3 = params
    N, C_in = x.shape
    H = w1.shape[1]
    C_out = w3.shape[1]
    out_dtype = x.dtype

    # Tiny problems: the fixed pallas_call launch cost beats any kernel win;
    # run the same eval-mode math with plain XLA matmuls.
    if N < small_n_threshold:
        h = jnp.maximum(x @ w1 + b1, 0.0)
        h = jnp.maximum(h @ w2 + b2, 0.0)
        return (h @ w3 + b3).astype(out_dtype)

    # Memory-bound kernel: bf16 operands (f32 MXU accumulation) halve x HBM
    # traffic; default on for large N, keep f32 for exact parity.
    if use_bf16 is None:
        use_bf16 = N >= _BF16_AUTO_THRESHOLD
    if use_bf16:
        x = x.astype(jnp.bfloat16)
        w1, w2, w3 = (w.astype(jnp.bfloat16) for w in (w1, w2, w3))

    # Lane-dense output folding factor (only when C_out evenly packs 128 lanes).
    fold = 128 // C_out if (0 < C_out < 128 and 128 % C_out == 0) else 1

    itemsize = jnp.dtype(x.dtype).itemsize
    run = functools.partial(_pallas_mlp, x, w1, b1, w2, b2, w3, b3,
                            N=N, C_in=C_in, H=H, C_out=C_out,
                            out_dtype=out_dtype)
    if fold == 1:
        return run(tile_n=_choose_tile(N, C_in, itemsize, 1), fold=1)
    try:
        return run(tile_n=_choose_tile(N, C_in, itemsize, fold), fold=fold)
    except Exception:
        # The lane-folding relayout failed to lower on this backend; fall back
        # to the plain (lane-sparse) output layout, which is always legal.
        return run(tile_n=_choose_tile(N, C_in, itemsize, 1), fold=1)


def init_params(key, in_channels, hidden_channels, out_channels):
    """Deterministic init mirroring torch.nn.Linear's U(-1/sqrt(fan_in), +)."""
    def linear(k, fan_in, fan_out):
        kw, kb = jax.random.split(k)
        bound = 1.0 / jnp.sqrt(jnp.float32(fan_in))
        w = jax.random.uniform(kw, (fan_in, fan_out), jnp.float32, -bound, bound)
        b = jax.random.uniform(kb, (1, fan_out), jnp.float32, -bound, bound)
        return w, b

    k1, k2, k3 = jax.random.split(key, 3)
    w1, b1 = linear(k1, in_channels, hidden_channels)
    w2, b2 = linear(k2, hidden_channels, hidden_channels)
    w3, b3 = linear(k3, hidden_channels, out_channels)
    return (w1, b1, w2, b2, w3, b3)


def reference_forward(x, params):
    w1, b1, w2, b2, w3, b3 = params
    h = jnp.maximum(x @ w1 + b1, 0.0)
    h = jnp.maximum(h @ w2 + b2, 0.0)
    return h @ w3 + b3


if __name__ == "__main__":
    key = jax.random.PRNGKey(0)
    kx, kp, ke = jax.random.split(key, 3)

    N = 64            # number of nodes
    in_channels = 16
    hidden_channels = 32
    out_channels = 8

    x = jax.random.normal(kx, (N, in_channels), jnp.float32)
    # edge_index is unused by the forward pass, but construct it for parity.
    edge_index = jax.random.randint(ke, (2, 128), 0, N, jnp.int32)

    params = init_params(kp, in_channels, hidden_channels, out_channels)

    # f32 Pallas path (exact parity with the torch module); small_n_threshold=0
    # forces the Pallas kernel even at this toy size.
    out = nn_model_forward(x, params, edge_index, use_bf16=False,
                           small_n_threshold=0)
    out = jax.block_until_ready(out)
    ref = reference_forward(x, params)
    assert out.shape == (N, out_channels)
    assert jnp.allclose(out, ref, atol=1e-5, rtol=1e-5)

    # Ragged node count (partial final block; no wrapper-side padding).
    x_odd = x[:50]
    out_odd = jax.block_until_ready(
        nn_model_forward(x_odd, params, edge_index, use_bf16=False,
                         small_n_threshold=0))
    ref_odd = reference_forward(x_odd, params)
    assert out_odd.shape == (50, out_channels)
    assert jnp.allclose(out_odd, ref_odd, atol=1e-5, rtol=1e-5)

    # bf16-operand MXU fast path (f32 accumulation), looser tolerance.
    out_bf16 = jax.block_until_ready(
        nn_model_forward(x, params, edge_index, use_bf16=True,
                         small_n_threshold=0))
    assert out_bf16.shape == (N, out_channels)
    assert jnp.allclose(out_bf16.astype(jnp.float32), ref, atol=1e-1, rtol=1e-1)

    # Small-N fallback path (plain XLA) for completeness.
    out_small = jax.block_until_ready(nn_model_forward(x, params, edge_index))
    assert jnp.allclose(out_small, ref, atol=1e-5, rtol=1e-5)

    print("KERNEL_OK")
</pallas_src>

<mosaic_0001>
module attributes {stable_mosaic.version = 11 : i64} {
  func.func @_mlp_kernel(%arg0: i32, %arg1: memref<64x16xf32, #tpu.memory_space<vmem>>, %arg2: memref<16x32xf32, #tpu.memory_space<vmem>>, %arg3: memref<1x32xf32, #tpu.memory_space<vmem>>, %arg4: memref<32x32xf32, #tpu.memory_space<vmem>>, %arg5: memref<1x32xf32, #tpu.memory_space<vmem>>, %arg6: memref<32x8xf32, #tpu.memory_space<vmem>>, %arg7: memref<1x8xf32, #tpu.memory_space<vmem>>, %arg8: memref<4x128xf32, #tpu.memory_space<vmem>>) attributes {dimension_semantics = [#tpu.dimension_semantics<parallel>], iteration_bounds = array<i64: 1>, scalar_prefetch = 0 : i64, scratch_operands = 0 : i64, tpu.core_type = #tpu.core_type<tc>, window_params = [{transform_indices = @transform_0, window_bounds = array<i64: 64, 16>}, {pipeline_mode = #tpu.pipeline_mode<synchronous>, transform_indices = @transform_1, window_bounds = array<i64: 16, 32>}, {pipeline_mode = #tpu.pipeline_mode<synchronous>, transform_indices = @transform_2, window_bounds = array<i64: 1, 32>}, {pipeline_mode = #tpu.pipeline_mode<synchronous>, transform_indices = @transform_3, window_bounds = array<i64: 32, 32>}, {pipeline_mode = #tpu.pipeline_mode<synchronous>, transform_indices = @transform_4, window_bounds = array<i64: 1, 32>}, {pipeline_mode = #tpu.pipeline_mode<synchronous>, transform_indices = @transform_5, window_bounds = array<i64: 32, 8>}, {pipeline_mode = #tpu.pipeline_mode<synchronous>, transform_indices = @transform_6, window_bounds = array<i64: 1, 8>}, {transform_indices = @transform_7, window_bounds = array<i64: 4, 128>}]} {
    %c0 = arith.constant 0 : index
    %c0_0 = arith.constant 0 : index
    %0 = vector.load %arg1[%c0, %c0_0] : memref<64x16xf32, #tpu.memory_space<vmem>>, vector<64x16xf32>
    %c0_1 = arith.constant 0 : index
    %c0_2 = arith.constant 0 : index
    %1 = vector.load %arg2[%c0_1, %c0_2] : memref<16x32xf32, #tpu.memory_space<vmem>>, vector<16x32xf32>
    %cst = arith.constant dense<0.000000e+00> : vector<64x32xf32>
    %2 = tpu.matmul %0, %1, %cst {dimension_numbers = #tpu.dot_dimension_numbers<[1], [0], [0], [1], [0, 0, 1, 1], [], []>} : vector<64x16xf32>, vector<16x32xf32>, vector<64x32xf32> -> vector<64x32xf32>
    %c0_3 = arith.constant 0 : index
    %c0_4 = arith.constant 0 : index
    %3 = vector.load %arg3[%c0_3, %c0_4] : memref<1x32xf32, #tpu.memory_space<vmem>>, vector<1x32xf32>
    %4 = vector.broadcast %3 : vector<1x32xf32> to vector<64x32xf32>
    %5 = arith.addf %2, %4 : vector<64x32xf32>
    %cst_5 = arith.constant 0.000000e+00 : f32
    %6 = vector.broadcast %cst_5 : f32 to vector<64x32xf32>
    %7 = arith.maximumf %5, %6 : vector<64x32xf32>
    %c0_6 = arith.constant 0 : index
    %c0_7 = arith.constant 0 : index
    %8 = vector.load %arg4[%c0_6, %c0_7] : memref<32x32xf32, #tpu.memory_space<vmem>>, vector<32x32xf32>
    %cst_8 = arith.constant dense<0.000000e+00> : vector<64x32xf32>
    %9 = tpu.matmul %7, %8, %cst_8 {dimension_numbers = #tpu.dot_dimension_numbers<[1], [0], [0], [1], [0, 0, 1, 1], [], []>} : vector<64x32xf32>, vector<32x32xf32>, vector<64x32xf32> -> vector<64x32xf32>
    %c0_9 = arith.constant 0 : index
    %c0_10 = arith.constant 0 : index
    %10 = vector.load %arg5[%c0_9, %c0_10] : memref<1x32xf32, #tpu.memory_space<vmem>>, vector<1x32xf32>
    %11 = vector.broadcast %10 : vector<1x32xf32> to vector<64x32xf32>
    %12 = arith.addf %9, %11 : vector<64x32xf32>
    %cst_11 = arith.constant 0.000000e+00 : f32
    %13 = vector.broadcast %cst_11 : f32 to vector<64x32xf32>
    %14 = arith.maximumf %12, %13 : vector<64x32xf32>
    %c0_12 = arith.constant 0 : index
    %c0_13 = arith.constant 0 : index
    %15 = vector.load %arg6[%c0_12, %c0_13] : memref<32x8xf32, #tpu.memory_space<vmem>>, vector<32x8xf32>
    %cst_14 = arith.constant dense<0.000000e+00> : vector<64x8xf32>
    %16 = tpu.matmul %14, %15, %cst_14 {dimension_numbers = #tpu.dot_dimension_numbers<[1], [0], [0], [1], [0, 0, 1, 1], [], []>} : vector<64x32xf32>, vector<32x8xf32>, vector<64x8xf32> -> vector<64x8xf32>
    %c0_15 = arith.constant 0 : index
    %c0_16 = arith.constant 0 : index
    %17 = vector.load %arg7[%c0_15, %c0_16] : memref<1x8xf32, #tpu.memory_space<vmem>>, vector<1x8xf32>
    %18 = vector.broadcast %17 : vector<1x8xf32> to vector<64x8xf32>
    %19 = arith.addf %16, %18 : vector<64x8xf32>
    %20 = vector.shape_cast %19 : vector<64x8xf32> to vector<4x128xf32>
    %c0_17 = arith.constant 0 : index
    %c0_18 = arith.constant 0 : index
    %21 = vector.load %arg8[%c0_17, %c0_18] : memref<4x128xf32, #tpu.memory_space<vmem>>, vector<4x128xf32>
    tpu.vector_store %arg8[%c0_17, %c0_18], %20 {strides = array<i32>} : memref<4x128xf32, #tpu.memory_space<vmem>>, vector<4x128xf32>,
    return
  }
  func.func @transform_0(%arg0: i32) -> (i32, i32) {
    %c0_i32 = arith.constant 0 : i32
    %c0_i32_0 = arith.constant 0 : i32
    return %arg0, %c0_i32 : i32, i32
  }
  func.func @transform_1(%arg0: i32) -> (i32, i32) {
    %c0_i32 = arith.constant 0 : i32
    %c0_i32_0 = arith.constant 0 : i32
    %c0_i32_1 = arith.constant 0 : i32
    return %c0_i32, %c0_i32_0 : i32, i32
  }
  func.func @transform_2(%arg0: i32) -> (i32, i32) {
    %c0_i32 = arith.constant 0 : i32
    %c0_i32_0 = arith.constant 0 : i32
    %c0_i32_1 = arith.constant 0 : i32
    return %c0_i32, %c0_i32_0 : i32, i32
  }
  func.func @transform_3(%arg0: i32) -> (i32, i32) {
    %c0_i32 = arith.constant 0 : i32
    %c0_i32_0 = arith.constant 0 : i32
    %c0_i32_1 = arith.constant 0 : i32
    return %c0_i32, %c0_i32_0 : i32, i32
  }
  func.func @transform_4(%arg0: i32) -> (i32, i32) {
    %c0_i32 = arith.constant 0 : i32
    %c0_i32_0 = arith.constant 0 : i32
    %c0_i32_1 = arith.constant 0 : i32
    return %c0_i32, %c0_i32_0 : i32, i32
  }
  func.func @transform_5(%arg0: i32) -> (i32, i32) {
    %c0_i32 = arith.constant 0 : i32
    %c0_i32_0 = arith.constant 0 : i32
    %c0_i32_1 = arith.constant 0 : i32
    return %c0_i32, %c0_i32_0 : i32, i32
  }
  func.func @transform_6(%arg0: i32) -> (i32, i32) {
    %c0_i32 = arith.constant 0 : i32
    %c0_i32_0 = arith.constant 0 : i32
    %c0_i32_1 = arith.constant 0 : i32
    return %c0_i32, %c0_i32_0 : i32, i32
  }
  func.func @transform_7(%arg0: i32) -> (i32, i32) {
    %c0_i32 = arith.constant 0 : i32
    %c0_i32_0 = arith.constant 0 : i32
    return %arg0, %c0_i32 : i32, i32
  }
}

module attributes {stable_mosaic.version = 11 : i64} {
  func.func @_mlp_kernel(%arg0: i32, %arg1: memref<64x16xf32, #tpu.memory_space<vmem>>, %arg2: memref<16x32xf32, #tpu.memory_space<vmem>>, %arg3: memref<1x32xf32, #tpu.memory_space<vmem>>, %arg4: memref<32x32xf32, #tpu.memory_space<vmem>>, %arg5: memref<1x32xf32, #tpu.memory_space<vmem>>, %arg6: memref<32x8xf32, #tpu.memory_space<vmem>>, %arg7: memref<1x8xf32, #tpu.memory_space<vmem>>, %arg8: memref<64x8xf32, #tpu.memory_space<vmem>>) attributes {dimension_semantics = [#tpu.dimension_semantics<parallel>], iteration_bounds = array<i64: 1>, scalar_prefetch = 0 : i64, scratch_operands = 0 : i64, tpu.core_type = #tpu.core_type<tc>, window_params = [{transform_indices = @transform_0, window_bounds = array<i64: 64, 16>}, {pipeline_mode = #tpu.pipeline_mode<synchronous>, transform_indices = @transform_1, window_bounds = array<i64: 16, 32>}, {pipeline_mode = #tpu.pipeline_mode<synchronous>, transform_indices = @transform_2, window_bounds = array<i64: 1, 32>}, {pipeline_mode = #tpu.pipeline_mode<synchronous>, transform_indices = @transform_3, window_bounds = array<i64: 32, 32>}, {pipeline_mode = #tpu.pipeline_mode<synchronous>, transform_indices = @transform_4, window_bounds = array<i64: 1, 32>}, {pipeline_mode = #tpu.pipeline_mode<synchronous>, transform_indices = @transform_5, window_bounds = array<i64: 32, 8>}, {pipeline_mode = #tpu.pipeline_mode<synchronous>, transform_indices = @transform_6, window_bounds = array<i64: 1, 8>}, {transform_indices = @transform_7, window_bounds = array<i64: 64, 8>}]} {
    %c0 = arith.constant 0 : index
    %c0_0 = arith.constant 0 : index
    %0 = vector.load %arg1[%c0, %c0_0] : memref<64x16xf32, #tpu.memory_space<vmem>>, vector<64x16xf32>
    %c0_1 = arith.constant 0 : index
    %c0_2 = arith.constant 0 : index
    %1 = vector.load %arg2[%c0_1, %c0_2] : memref<16x32xf32, #tpu.memory_space<vmem>>, vector<16x32xf32>
    %cst = arith.constant dense<0.000000e+00> : vector<64x32xf32>
    %2 = tpu.matmul %0, %1, %cst {dimension_numbers = #tpu.dot_dimension_numbers<[1], [0], [0], [1], [0, 0, 1, 1], [], []>} : vector<64x16xf32>, vector<16x32xf32>, vector<64x32xf32> -> vector<64x32xf32>
    %c0_3 = arith.constant 0 : index
    %c0_4 = arith.constant 0 : index
    %3 = vector.load %arg3[%c0_3, %c0_4] : memref<1x32xf32, #tpu.memory_space<vmem>>, vector<1x32xf32>
    %4 = vector.broadcast %3 : vector<1x32xf32> to vector<64x32xf32>
    %5 = arith.addf %2, %4 : vector<64x32xf32>
    %cst_5 = arith.constant 0.000000e+00 : f32
    %6 = vector.broadcast %cst_5 : f32 to vector<64x32xf32>
    %7 = arith.maximumf %5, %6 : vector<64x32xf32>
    %c0_6 = arith.constant 0 : index
    %c0_7 = arith.constant 0 : index
    %8 = vector.load %arg4[%c0_6, %c0_7] : memref<32x32xf32, #tpu.memory_space<vmem>>, vector<32x32xf32>
    %cst_8 = arith.constant dense<0.000000e+00> : vector<64x32xf32>
    %9 = tpu.matmul %7, %8, %cst_8 {dimension_numbers = #tpu.dot_dimension_numbers<[1], [0], [0], [1], [0, 0, 1, 1], [], []>} : vector<64x32xf32>, vector<32x32xf32>, vector<64x32xf32> -> vector<64x32xf32>
    %c0_9 = arith.constant 0 : index
    %c0_10 = arith.constant 0 : index
    %10 = vector.load %arg5[%c0_9, %c0_10] : memref<1x32xf32, #tpu.memory_space<vmem>>, vector<1x32xf32>
    %11 = vector.broadcast %10 : vector<1x32xf32> to vector<64x32xf32>
    %12 = arith.addf %9, %11 : vector<64x32xf32>
    %cst_11 = arith.constant 0.000000e+00 : f32
    %13 = vector.broadcast %cst_11 : f32 to vector<64x32xf32>
    %14 = arith.maximumf %12, %13 : vector<64x32xf32>
    %c0_12 = arith.constant 0 : index
    %c0_13 = arith.constant 0 : index
    %15 = vector.load %arg6[%c0_12, %c0_13] : memref<32x8xf32, #tpu.memory_space<vmem>>, vector<32x8xf32>
    %cst_14 = arith.constant dense<0.000000e+00> : vector<64x8xf32>
    %16 = tpu.matmul %14, %15, %cst_14 {dimension_numbers = #tpu.dot_dimension_numbers<[1], [0], [0], [1], [0, 0, 1, 1], [], []>} : vector<64x32xf32>, vector<32x8xf32>, vector<64x8xf32> -> vector<64x8xf32>
    %c0_15 = arith.constant 0 : index
    %c0_16 = arith.constant 0 : index
    %17 = vector.load %arg7[%c0_15, %c0_16] : memref<1x8xf32, #tpu.memory_space<vmem>>, vector<1x8xf32>
    %18 = vector.broadcast %17 : vector<1x8xf32> to vector<64x8xf32>
    %19 = arith.addf %16, %18 : vector<64x8xf32>
    %c0_17 = arith.constant 0 : index
    %c0_18 = arith.constant 0 : index
    %20 = vector.load %arg8[%c0_17, %c0_18] : memref<64x8xf32, #tpu.memory_space<vmem>>, vector<64x8xf32>
    tpu.vector_store %arg8[%c0_17, %c0_18], %19 {strides = array<i32>} : memref<64x8xf32, #tpu.memory_space<vmem>>, vector<64x8xf32>,
    return
  }
  func.func @transform_0(%arg0: i32) -> (i32, i32) {
    %c0_i32 = arith.constant 0 : i32
    %c0_i32_0 = arith.constant 0 : i32
    return %arg0, %c0_i32 : i32, i32
  }
  func.func @transform_1(%arg0: i32) -> (i32, i32) {
    %c0_i32 = arith.constant 0 : i32
    %c0_i32_0 = arith.constant 0 : i32
    %c0_i32_1 = arith.constant 0 : i32
    return %c0_i32, %c0_i32_0 : i32, i32
  }
  func.func @transform_2(%arg0: i32) -> (i32, i32) {
    %c0_i32 = arith.constant 0 : i32
    %c0_i32_0 = arith.constant 0 : i32
    %c0_i32_1 = arith.constant 0 : i32
    return %c0_i32, %c0_i32_0 : i32, i32
  }
  func.func @transform_3(%arg0: i32) -> (i32, i32) {
    %c0_i32 = arith.constant 0 : i32
    %c0_i32_0 = arith.constant 0 : i32
    %c0_i32_1 = arith.constant 0 : i32
    return %c0_i32, %c0_i32_0 : i32, i32
  }
  func.func @transform_4(%arg0: i32) -> (i32, i32) {
    %c0_i32 = arith.constant 0 : i32
    %c0_i32_0 = arith.constant 0 : i32
    %c0_i32_1 = arith.constant 0 : i32
    return %c0_i32, %c0_i32_0 : i32, i32
  }
  func.func @transform_5(%arg0: i32) -> (i32, i32) {
    %c0_i32 = arith.constant 0 : i32
    %c0_i32_0 = arith.constant 0 : i32
    %c0_i32_1 = arith.constant 0 : i32
    return %c0_i32, %c0_i32_0 : i32, i32
  }
  func.func @transform_6(%arg0: i32) -> (i32, i32) {
    %c0_i32 = arith.constant 0 : i32
    %c0_i32_0 = arith.constant 0 : i32
    %c0_i32_1 = arith.constant 0 : i32
    return %c0_i32, %c0_i32_0 : i32, i32
  }
  func.func @transform_7(%arg0: i32) -> (i32, i32) {
    %c0_i32 = arith.constant 0 : i32
    %c0_i32_0 = arith.constant 0 : i32
    return %arg0, %c0_i32 : i32, i32
  }
}

</mosaic_0001>

<bundles_post_ra>
// kernel: tpu_custom_call.1
= control target key start
LH: loop header
LB: loop body
LE: loop exit
PB: predicated region body
PF: predicated region fallthrough
CT: control target
= control target key end

     0   :  { %vm43_vm0 = vcmask 130048   ;;  %vm192_vm1 = vcmask 261120   ;;  %vm470_vm2 = vcmask 64512   ;;  %s763_s1 = inlined_call_operand.vmem [shape: f32[16,32], index: 1, kind: input, shape index: {}]   ;;  %s764_s0 = inlined_call_operand.vmem [shape: f32[64,16], index: 0, kind: input, shape index: {}]   ;;  %s765_s3 = inlined_call_operand.vmem [shape: f32[32,32], index: 3, kind: input, shape index: {}]   ;;  %s766_s5 = inlined_call_operand.vmem [shape: f32[32,8], index: 5, kind: input, shape index: {}]   ;;  %s767_s2 = inlined_call_operand.vmem [shape: f32[1,32], index: 2, kind: input, shape index: {}]   ;;  %s768_s4 = inlined_call_operand.vmem [shape: f32[1,32], index: 4, kind: input, shape index: {}]   ;;  %s769_s6 = inlined_call_operand.vmem [shape: f32[1,8], index: 6, kind: input, shape index: {}]   ;;  %s770_s7 = inlined_call_operand.vmem [shape: f32[64,8], index: 7, kind: output, shape index: {}]  }
   0x1   :  { %v35_v0 = vld [vmem:[%s763_s1 + $0x8] sm:$0xff]  ;;  %v34_v1 = vld [vmem:[%s763_s1] sm:$0xff]  ;;  %v28_v4 = vld [vmem:[%s764_s0 + $0x10] sm:$0xff] }
   0x2   :  { %v26_v2 = vld [vmem:[%s764_s0] sm:$0xff]  ;;  %544 = vmatprep.subr.mxu0 %v35_v0  ;;  %v27_v3 = vld [vmem:[%s764_s0 + $0x8] sm:$0xff]  ;;  %600 = vmatprep.subr.mxu1 %v35_v0  ;;  %v184_v7 = vld [vmem:[%s765_s3 + $0x18] sm:$0xff] }
   0x3   :  { %548 = vmatprep.mubr.msk.f32.mxu0 %vm43_vm0, %v26_v2  ;;  %545 = vmatpush3.msra.mxu0 %v35_v0  ;;  %v30_v5 = vld [vmem:[%s764_s0 + $0x20] sm:$0xff]  ;;  %v31_v6 = vld [vmem:[%s764_s0 + $0x28] sm:$0xff]  ;;  %v32_v8 = vld [vmem:[%s764_s0 + $0x30] sm:$0xff] }
   0x4   :  { %546 = vmatprep.subr.mxu0 %v34_v1  ;;  %602 = vmatpush3.msra.mxu1 %v35_v0  ;;  %v29_v9 = vld [vmem:[%s764_s0 + $0x18] sm:$0xff]  ;;  %v183_v11 = vld [vmem:[%s765_s3 + $0x10] sm:$0xff]  ;;  %v182_v12 = vld [vmem:[%s765_s3 + $0x8] sm:$0xff] }
   0x5   :  { %547 = vmatpush3.msra.mxu0 %v34_v1  ;;  %601 = vmatprep.subr.mxu1 %v34_v1  ;;  %v33_v10 = vld [vmem:[%s764_s0 + $0x38] sm:$0xff]  ;;  %v181_v13 = vld [vmem:[%s765_s3] sm:$0xff]  ;;  %v332_v40 = vld [vmem:[%s766_s5 + $0x10] sm:$0xff] }
   0x6   :  { %549 = vmatmul.mubr.msk.f32.vlgmr.msra.gmra.mxu0 %vm43_vm0, %v27_v3  ;;  %603 = vmatpush3.msra.mxu1 %v34_v1  ;;  %v333_v14 = vld [vmem:[%s766_s5 + $0x18] sm:$0xff]  ;;  %v483_v15 = vld [vmem:[%s767_s2] ss:$0 sm:$0xff]  ;;  %v331_v41 = vld [vmem:[%s766_s5 + $0x8] sm:$0xff] }
   0x7   :  { %551 = vmatprep.mubr.msk.f32.mxu0 %vm43_vm0, %v28_v4  ;;  %554 = vmatprep.mubr.msk.f32.mxu1 %vm43_vm0, %v30_v5  ;;  %v330_v42 = vld [vmem:[%s766_s5] sm:$0xff] }
   0x8   :  { %555 = vmatmul.mubr.msk.f32.vlgmr.msra.gmra.mxu1 %vm43_vm0, %v31_v6  ;;  %560 = vmatprep.subr.mxu1 %v184_v7  ;;  %v492_v43 = vld [vmem:[%s768_s4] ss:$0 sm:$0xff] }
   0x9   :  { %557 = vmatprep.mubr.msk.f32.mxu1 %vm43_vm0, %v32_v8  ;;  %561 = vmatpush3.msra.mxu1 %v184_v7  ;;  %v501_v4 = vld [vmem:[%s769_s6] ss:$0 sm:$0xff] }
   0xa   :  { %552 = vmatmul.mubr.msk.f32.gmra.mxu0 %vm43_vm0, %v29_v9  ;;  %562 = vmatprep.subr.mxu1 %v183_v11 }
   0xb   :  { %563 = vmatpush3.msra.mxu1 %v183_v11  ;;  %580 = vmatprep.subr.mxu0 %v333_v14 }
   0xc   :  { %558 = vmatmul.mubr.msk.f32.gmra.mxu1 %vm43_vm0, %v33_v10  ;;  %564 = vmatprep.subr.mxu1 %v182_v12 }
   0xd   :  { %565 = vmatpush3.msra.mxu1 %v182_v12  ;;  %581 = vmatpush3.msra.mxu0 %v333_v14 }
   0xe   :  { %566 = vmatprep.subr.mxu1 %v181_v13  ;;  %582 = vmatprep.subr.mxu0 %v332_v40 }
   0xf   :  { %567 = vmatpush3.msra.mxu1 %v181_v13  ;;  %583 = vmatpush3.msra.mxu0 %v332_v40 }
  0x10   :  { %584 = vmatprep.subr.mxu0 %v331_v41 }
  0x11   :  { %585 = vmatpush3.msra.mxu0 %v331_v41 }
  0x12   :  { %586 = vmatprep.subr.mxu0 %v330_v42 }
  0x13   :  { %587 = vmatpush3.msra.mxu0 %v330_v42 }
  0xc6   :  { %v550_v16 = vpop.f32.mrf.mxu0 }
  0xc7   :  { %v140_v17 = vadd.f32 %v550_v16, %v483_v15 }
  0xc8   :  { %v134_v18 = vpop.f32.mrf.mxu0  ;;  %v556_v19 = vpop.f32.mrf.mxu1 }
  0xc9   :  { %v135_v20 = vadd.f32 %v483_v15, %v134_v18  ;;  %v174_v25 = vmax.f32 %v140_v17, 0.0  ;;  %v160_v35 = vadd.f32 %v556_v19, %v483_v15 }
  0xca   :  { %v553_v21 = vpop.f32.mrf.mxu0  ;;  %v154_v22 = vpop.f32.mrf.mxu1 }
  0xcb   :  { %v173_v23 = vmax.f32 %v135_v20, 0.0  ;;  %v155_v24 = vadd.f32 %v483_v15, %v154_v22  ;;  %v150_v26 = vadd.f32 %v553_v21, %v483_v15  ;;  %v178_v37 = vmax.f32 %v160_v35, 0.0 }
  0xcc   :  { %v144_v27 = vpop.f32.mrf.mxu0  ;;  %v559_v28 = vpop.f32.mrf.mxu1 }
  0xcd   :  { %v145_v29 = vadd.f32 %v483_v15, %v144_v27  ;;  %568 = vmatprep.mubr.msk.f32.mxu1 %vm192_vm1, %v173_v23  ;;  %v177_v32 = vmax.f32 %v155_v24, 0.0  ;;  %v176_v34 = vmax.f32 %v150_v26, 0.0  ;;  %v170_v38 = vadd.f32 %v559_v28, %v483_v15 }
  0xce   :  { %569 = vmatmul.mubr.msk.f32.vlgmr.msra.gmra.mxu1 %vm192_vm1, %v174_v25  ;;  %v164_v30 = vpop.f32.mrf.mxu1 }
  0xcf   :  { %v175_v31 = vmax.f32 %v145_v29, 0.0  ;;  %v165_v33 = vadd.f32 %v483_v15, %v164_v30  ;;  %v180_v39 = vmax.f32 %v170_v38, 0.0 }
  0xd1   :  { %571 = vmatprep.mubr.msk.f32.mxu1 %vm192_vm1, %v175_v31  ;;  %v179_v36 = vmax.f32 %v165_v33, 0.0 }
  0xd2   :  { %572 = vmatmul.mubr.msk.f32.gmra.mxu1 %vm192_vm1, %v176_v34 }
  0xd3   :  { %574 = vmatprep.mubr.msk.f32.mxu1 %vm192_vm1, %v177_v32 }
  0xd6   :  { %575 = vmatmul.mubr.msk.f32.gmra.mxu1 %vm192_vm1, %v178_v37 }
  0xd7   :  { %577 = vmatprep.mubr.msk.f32.mxu1 %vm192_vm1, %v179_v36 }
  0xda   :  { %578 = vmatmul.mubr.msk.f32.gmra.mxu1 %vm192_vm1, %v180_v39 }
 0x18e   :  { %v570_v44 = vpop.f32.mrf.mxu1 }
 0x18f   :  { %v289_v45 = vadd.f32 %v570_v44, %v492_v43 }
 0x190   :  { %v283_v46 = vpop.f32.mrf.mxu1 }
 0x191   :  { %v284_v47 = vadd.f32 %v492_v43, %v283_v46  ;;  %v323_v50 = vmax.f32 %v289_v45, 0.0 }
 0x192   :  { %v573_v48 = vpop.f32.mrf.mxu1 }
 0x193   :  { %v322_v49 = vmax.f32 %v284_v47, 0.0  ;;  %v299_v51 = vadd.f32 %v573_v48, %v492_v43 }
 0x194   :  { %v293_v52 = vpop.f32.mrf.mxu1 }
 0x195   :  { %v294_v53 = vadd.f32 %v492_v43, %v293_v52  ;;  %588 = vmatprep.mubr.msk.f32.mxu0 %vm192_vm1, %v322_v49  ;;  %v325_v56 = vmax.f32 %v299_v51, 0.0 }
 0x196   :  { %v576_v54 = vpop.f32.mrf.mxu1  ;;  %589 = vmatmul.mubr.msk.f32.vlgmr.msra.gmra.mxu0 %vm192_vm1, %v323_v50 }
 0x197   :  { %v324_v55 = vmax.f32 %v294_v53, 0.0  ;;  %v309_v57 = vadd.f32 %v576_v54, %v492_v43 }
 0x198   :  { %v303_v58 = vpop.f32.mrf.mxu1 }
 0x199   :  { %v304_v59 = vadd.f32 %v492_v43, %v303_v58  ;;  %591 = vmatprep.mubr.msk.f32.mxu0 %vm192_vm1, %v324_v55  ;;  %v327_v62 = vmax.f32 %v309_v57, 0.0 }
 0x19a   :  { %v579_v60 = vpop.f32.mrf.mxu1  ;;  %592 = vmatmul.mubr.msk.f32.gmra.mxu0 %vm192_vm1, %v325_v56 }
 0x19b   :  { %v326_v61 = vmax.f32 %v304_v59, 0.0  ;;  %v319_v63 = vadd.f32 %v579_v60, %v492_v43 }
 0x19c   :  { %v313_v0 = vpop.f32.mrf.mxu1 }
 0x19d   :  { %v314_v1 = vadd.f32 %v492_v43, %v313_v0  ;;  %594 = vmatprep.mubr.msk.f32.mxu0 %vm192_vm1, %v326_v61  ;;  %v329_v3 = vmax.f32 %v319_v63, 0.0 }
 0x19e   :  { %595 = vmatmul.mubr.msk.f32.gmra.mxu0 %vm192_vm1, %v327_v62 }
 0x19f   :  { %v328_v2 = vmax.f32 %v314_v1, 0.0 }
 0x1a1   :  { %597 = vmatprep.mubr.msk.f32.mxu0 %vm192_vm1, %v328_v2 }
 0x1a2   :  { %598 = vmatmul.mubr.msk.f32.gmra.mxu0 %vm192_vm1, %v329_v3 }
 0x256   :  { %v590_v5 = vpop.f32.mrf.mxu0 }
 0x257   :  { %v437_v6 = vadd.f32 %v590_v5, %v501_v4 }
 0x258   :  { %v431_v7 = vpop.f32.mrf.mxu0 }
 0x259   :  { %472 = vst.msk [vmem:[%s770_s7 + $0x8] sm:$0xff] %vm470_vm2, %v437_v6  ;;  %v432_v8 = vadd.f32 %v501_v4, %v431_v7 }
 0x25a   :  { %v593_v9 = vpop.f32.mrf.mxu0 }
 0x25b   :  { %471 = vst.msk [vmem:[%s770_s7] sm:$0xff] %vm470_vm2, %v432_v8  ;;  %v447_v10 = vadd.f32 %v593_v9, %v501_v4 }
 0x25c   :  { %v441_v11 = vpop.f32.mrf.mxu0 }
 0x25d   :  { %474 = vst.msk [vmem:[%s770_s7 + $0x18] sm:$0xff] %vm470_vm2, %v447_v10  ;;  %v442_v12 = vadd.f32 %v501_v4, %v441_v11 }
 0x25e   :  { %v596_v13 = vpop.f32.mrf.mxu0 }
 0x25f   :  { %473 = vst.msk [vmem:[%s770_s7 + $0x10] sm:$0xff] %vm470_vm2, %v442_v12  ;;  %v457_v14 = vadd.f32 %v596_v13, %v501_v4 }
 0x260   :  { %v451_v15 = vpop.f32.mrf.mxu0 }
 0x261   :  { %476 = vst.msk [vmem:[%s770_s7 + $0x28] sm:$0xff] %vm470_vm2, %v457_v14  ;;  %v452_v16 = vadd.f32 %v501_v4, %v451_v15 }
 0x262   :  { %v599_v17 = vpop.f32.mrf.mxu0 }
 0x263   :  { %475 = vst.msk [vmem:[%s770_s7 + $0x20] sm:$0xff] %vm470_vm2, %v452_v16  ;;  %v467_v18 = vadd.f32 %v599_v17, %v501_v4 }
 0x264   :  { %v461_v19 = vpop.f32.mrf.mxu0 }
 0x265   :  { %478 = vst.msk [vmem:[%s770_s7 + $0x38] sm:$0xff] %vm470_vm2, %v467_v18  ;;  %v462_v20 = vadd.f32 %v501_v4, %v461_v19 }
 0x267   :  { %477 = vst.msk [vmem:[%s770_s7 + $0x30] sm:$0xff] %vm470_vm2, %v462_v20 }

</bundles_post_ra>
